<compile_context>
chip_gen: v6e
topology: v6e:2x2x1
jax: 0.10.0
libtpu: 0.0.40
codegen_flags: <defaults>
</compile_context>

<pallas_src>
import functools

import jax
import jax.numpy as jnp
from jax import lax
from jax.experimental import pallas as pl
from jax.experimental.pallas import tpu as pltpu


# --------------------------------------------------------------------------- #
# Kernel bodies
# --------------------------------------------------------------------------- #
def _mlp_step(emb, w1t_ref, b1_ref, w2_ref, b2_ref, out_ref, *, n_steps):
    """One hidden-axis tile of Linear1 -> SiLU -> Linear2, accumulated into out_ref.

    emb:  (B, D) activations already cast to the weight dtype.
    w1t:  (tk, D) rows of the first Linear's weight (PyTorch layout), so
          h = emb @ w1t.T   (contraction on D; NT matmul on the MXU).
    w2:   (tk, D) rows of the second Linear's weight (math layout), so
          out += silu(h) @ w2.
    """
    h = lax.dot_general(
        emb, w1t_ref[...],
        dimension_numbers=(((1,), (1,)), ((), ())),
        preferred_element_type=jnp.float32) + b1_ref[...]
    h = h * jax.nn.sigmoid(h)                                  # SiLU in f32
    partial = jnp.dot(h.astype(w2_ref.dtype), w2_ref[...],
                      preferred_element_type=jnp.float32)

    if n_steps == 1:
        out_ref[...] = partial + b2_ref[...]
    else:
        j = pl.program_id(0)

        @pl.when(j == 0)
        def _init():
            out_ref[...] = partial

        @pl.when(j > 0)
        def _accum():
            out_ref[...] += partial

        @pl.when(j == n_steps - 1)
        def _finalize():
            out_ref[...] += b2_ref[...]


def _cond_embed_small_kernel(idx_ref,            # SMEM (B,) int32 (scalar prefetch)
                             table_ref,          # VMEM (n_classes, D)
                             w1t_ref,            # VMEM (tk, D) weight rows
                             b1_ref,             # VMEM (1, tk) f32
                             w2_ref,             # VMEM (tk, D) weight rows
                             b2_ref,             # VMEM (1, D) f32
                             out_ref,            # VMEM (B, D) f32 (resident acc)
                             emb_ref,            # scratch VMEM (B, D) weight dtype
                             *, batch, n_steps):
    def gather():
        # Table is already resident in VMEM via one bulk pipeline DMA; gather
        # the B rows with in-VMEM dynamic slices and cast once to weight dtype.
        for b in range(batch):
            row = table_ref[pl.ds(idx_ref[b], 1), :]
            emb_ref[pl.ds(b, 1), :] = row.astype(emb_ref.dtype)

    if n_steps == 1:
        gather()
    else:
        pl.when(pl.program_id(0) == 0)(gather)

    _mlp_step(emb_ref[...], w1t_ref, b1_ref, w2_ref, b2_ref, out_ref,
              n_steps=n_steps)


def _cond_embed_large_kernel(idx_ref,            # SMEM (B,) int32 (scalar prefetch)
                             table_ref,          # HBM (n_classes, D) (pl.ANY)
                             w1t_ref, b1_ref, w2_ref, b2_ref,
                             out_ref,            # VMEM (B, D) f32 (resident acc)
                             emb_raw_ref,        # scratch VMEM (B, D) table dtype
                             emb_ref,            # scratch VMEM (B, D) weight dtype
                             sem,                # DMA semaphores (B,)
                             *, batch, n_steps):
    def gather():
        # Per-row HBM -> VMEM DMA gather: start all copies first, then wait.
        copies = []
        for b in range(batch):
            cp = pltpu.make_async_copy(table_ref.at[pl.ds(idx_ref[b], 1)],
                                       emb_raw_ref.at[pl.ds(b, 1)],
                                       sem.at[b])
            cp.start()
            copies.append(cp)
        for cp in copies:
            cp.wait()
        # Hoisted cast: pack to the weight dtype once, not on every grid step.
        emb_ref[...] = emb_raw_ref[...].astype(emb_ref.dtype)

    if n_steps == 1:
        gather()
    else:
        pl.when(pl.program_id(0) == 0)(gather)

    _mlp_step(emb_ref[...], w1t_ref, b1_ref, w2_ref, b2_ref, out_ref,
              n_steps=n_steps)


# --------------------------------------------------------------------------- #
# Wrapper / tiling logic
# --------------------------------------------------------------------------- #
def _round_up(x, m):
    return ((x + m - 1) // m) * m


def _padded_bytes(rows, cols, itemsize):
    """Approximate VMEM footprint of a (rows, cols) block after (8,128) tiling."""
    return _round_up(max(rows, 1), 8) * _round_up(max(cols, 1), 128) * itemsize


def _pick_hidden_tile(hidden, dim, wbytes, budget, fixed):
    """Largest hidden tile whose (double-buffered) weight stream fits `budget`."""
    def stream_bytes(tk, nbuf):
        per_step = (2 * _padded_bytes(tk, dim, wbytes)   # w1t tile + w2 tile
                    + _padded_bytes(1, tk, 4))           # b1 tile
        return nbuf * per_step

    if fixed + stream_bytes(hidden, 2) <= budget:
        return hidden                                    # whole weights resident
    cands = [d for d in range(128, hidden, 128) if hidden % d == 0]
    fitting = [d for d in cands if fixed + stream_bytes(d, 2) <= budget]
    if fitting:
        return max(fitting)
    return min(cands) if cands else hidden               # best effort


def condition_embedding(idx, table, w1, b1, w2, b2, *,
                        hidden_tile=None,
                        vmem_budget_bytes=None,
                        small_table_bytes=2 * 1024 * 1024):
    """Fused embedding lookup + MLP.

    idx:   (B,) int32 class ids.
    table: (n_classes, dim) embedding table (f32).
    w1:    (4*dim, dim) first Linear weight in PyTorch nn.Linear layout
           (out_features, in_features):        h = emb @ w1.T + b1
    b1:    (4*dim,)
    w2:    (4*dim, dim) second Linear weight in math layout (= fc2.weight.T):
           out = silu(h) @ w2 + b2
    b2:    (dim,)
    Returns (B, dim) float32.
    """
    B = idx.shape[0]
    n_classes, dim = table.shape
    hidden = w1.shape[0]
    assert w1.shape == (hidden, dim) and w2.shape == (hidden, dim)
    assert b1.shape == (hidden,) and b2.shape == (dim,)

    wdt = w1.dtype
    wbytes = jnp.dtype(wdt).itemsize
    tbytes = jnp.dtype(table.dtype).itemsize

    # Per-generation VMEM budget for pipeline buffers: <= ~48 MiB is safe on
    # v7x (64 MiB physical); v5e/v6e (128 MiB physical) get up to 96 MiB.
    if vmem_budget_bytes is None:
        try:
            cap = pltpu.get_tpu_info().vmem_capacity_bytes
        except Exception:
            cap = 64 * 1024 * 1024
        vmem_budget_bytes = min((cap * 3) // 4, 96 * 1024 * 1024)

    small_table = n_classes * dim * tbytes <= small_table_bytes

    # Fixed resident VMEM (everything except the streamed weight tiles).
    fixed = 2 * _padded_bytes(B, dim, 4)          # output block (f32)
    fixed += 2 * _padded_bytes(1, dim, 4)         # b2
    fixed += _padded_bytes(B, dim, wbytes)        # emb scratch (weight dtype)
    if small_table:
        fixed += 2 * _padded_bytes(n_classes, dim, tbytes)   # table in VMEM
    else:
        fixed += _padded_bytes(B, dim, tbytes)               # raw gather scratch

    if hidden_tile is None:
        hidden_tile = _pick_hidden_tile(hidden, dim, wbytes,
                                        vmem_budget_bytes, fixed)
    assert hidden % hidden_tile == 0, "hidden_tile must divide hidden"
    n_tiles = hidden // hidden_tile

    def stream_bytes(tk):
        return 2 * (2 * _padded_bytes(tk, dim, wbytes) + _padded_bytes(1, tk, 4))

    est = fixed + stream_bytes(hidden_tile)
    vmem_limit = int(min(max(2 * est, 32 * 1024 * 1024), vmem_budget_bytes))

    cost = pl.CostEstimate(
        flops=2 * B * dim * hidden * 2,                       # two matmuls
        transcendentals=B * hidden,                           # sigmoid
        bytes_accessed=(B * dim * tbytes                      # gathered rows
                        + 2 * hidden * dim * wbytes           # w1 + w2
                        + (hidden + dim) * 4                  # biases
                        + B * dim * 4),                       # output
    )

    b1_2d = b1.reshape(1, hidden).astype(jnp.float32)
    b2_2d = b2.reshape(1, dim).astype(jnp.float32)
    idx_i32 = idx.astype(jnp.int32)

    if small_table:
        kernel = functools.partial(_cond_embed_small_kernel,
                                   batch=B, n_steps=n_tiles)
        table_spec = pl.BlockSpec((n_classes, dim), lambda j, ids: (0, 0))
        scratch = [pltpu.VMEM((B, dim), wdt)]                 # emb rows
    else:
        kernel = functools.partial(_cond_embed_large_kernel,
                                   batch=B, n_steps=n_tiles)
        table_spec = pl.BlockSpec(memory_space=pl.ANY)        # table stays in HBM
        scratch = [pltpu.VMEM((B, dim), table.dtype),         # raw gathered rows
                   pltpu.VMEM((B, dim), wdt),                 # cast rows
                   pltpu.SemaphoreType.DMA((B,))]

    grid_spec = pltpu.PrefetchScalarGridSpec(
        num_scalar_prefetch=1,               # idx -> SMEM
        grid=(n_tiles,),
        in_specs=[
            table_spec,
            pl.BlockSpec((hidden_tile, dim), lambda j, ids: (j, 0)),   # w1 rows
            pl.BlockSpec((1, hidden_tile), lambda j, ids: (0, j)),     # b1 tile
            pl.BlockSpec((hidden_tile, dim), lambda j, ids: (j, 0)),   # w2 rows
            pl.BlockSpec((1, dim), lambda j, ids: (0, 0)),             # b2
        ],
        out_specs=pl.BlockSpec((B, dim), lambda j, ids: (0, 0)),
        scratch_shapes=scratch,
    )

    return pl.pallas_call(
        kernel,
        out_shape=jax.ShapeDtypeStruct((B, dim), jnp.float32),
        grid_spec=grid_spec,
        compiler_params=pltpu.CompilerParams(
            dimension_semantics=("arbitrary",),   # hidden axis is a reduction
            vmem_limit_bytes=vmem_limit),
        cost_estimate=cost,
    )(idx_i32, table, w1, b1_2d, w2, b2_2d)


# --------------------------------------------------------------------------- #
# Self-test
# --------------------------------------------------------------------------- #
if __name__ == "__main__":
    def reference(idx, table, w1, b1, w2, b2):
        emb = table[idx]
        h = jnp.dot(emb.astype(w1.dtype), w1.T,
                    preferred_element_type=jnp.float32) + b1
        h = h * jax.nn.sigmoid(h)
        return jnp.dot(h.astype(w2.dtype), w2,
                       preferred_element_type=jnp.float32) + b2

    def make_inputs(key, batch, n_classes, dim, wdtype):
        hidden = 4 * dim
        ks = jax.random.split(key, 6)
        idx = jax.random.randint(ks[0], (batch,), 0, n_classes, dtype=jnp.int32)
        table = jax.random.normal(ks[1], (n_classes, dim), jnp.float32)
        w1 = (jax.random.normal(ks[2], (hidden, dim), jnp.float32) * 0.05
              ).astype(wdtype)
        b1 = jax.random.normal(ks[3], (hidden,), jnp.float32) * 0.01
        w2 = (jax.random.normal(ks[4], (hidden, dim), jnp.float32) * 0.05
              ).astype(wdtype)
        b2 = jax.random.normal(ks[5], (dim,), jnp.float32) * 0.01
        return idx, table, w1, b1, w2, b2

    key = jax.random.PRNGKey(0)
    k1, k2 = jax.random.split(key)

    # Config 1: small table + small weights -> in-VMEM gather and a single-step
    # grid with the whole weight set resident; pure f32 like the PyTorch module.
    args1 = make_inputs(k1, batch=8, n_classes=16, dim=128, wdtype=jnp.float32)
    out1 = jax.block_until_ready(condition_embedding(*args1))
    ref1 = reference(*args1)
    assert out1.shape == (8, 128)
    err1 = float(jnp.max(jnp.abs(out1 - ref1)))
    assert jnp.allclose(out1, ref1, atol=1e-2, rtol=1e-2), err1

    # Config 2: force the large-vocabulary / streaming path at small shapes:
    # per-row DMA gather + 2-step hidden-axis weight streaming, bf16 weights.
    args2 = make_inputs(k2, batch=8, n_classes=32, dim=128, wdtype=jnp.bfloat16)
    out2 = jax.block_until_ready(
        condition_embedding(*args2, hidden_tile=256, small_table_bytes=0))
    ref2 = reference(*args2)
    err2 = float(jnp.max(jnp.abs(out2 - ref2)))
    assert jnp.allclose(out2, ref2, atol=2e-2, rtol=2e-2), err2

    print("KERNEL_OK")
</pallas_src>

<mosaic_0001>
module attributes {stable_mosaic.version = 11 : i64} {
  func.func @_cond_embed_small_kernel(%arg0: i32, %arg1: memref<8xi32, #tpu.memory_space<smem>>, %arg2: memref<16x128xf32, #tpu.memory_space<vmem>>, %arg3: memref<512x128xf32, #tpu.memory_space<vmem>>, %arg4: memref<1x512xf32, #tpu.memory_space<vmem>>, %arg5: memref<512x128xf32, #tpu.memory_space<vmem>>, %arg6: memref<1x128xf32, #tpu.memory_space<vmem>>, %arg7: memref<8x128xf32, #tpu.memory_space<vmem>>, %arg8: memref<8x128xf32, #tpu.memory_space<vmem>>) attributes {dimension_semantics = [#tpu.dimension_semantics<arbitrary>], iteration_bounds = array<i64: 1>, scalar_prefetch = 1 : i64, scratch_operands = 1 : i64, tpu.core_type = #tpu.core_type<tc>, window_params = [{pipeline_mode = #tpu.pipeline_mode<synchronous>, transform_indices = @transform_0, window_bounds = array<i64: 16, 128>}, {transform_indices = @transform_1, window_bounds = array<i64: 512, 128>}, {transform_indices = @transform_2, window_bounds = array<i64: 1, 512>}, {transform_indices = @transform_3, window_bounds = array<i64: 512, 128>}, {pipeline_mode = #tpu.pipeline_mode<synchronous>, transform_indices = @transform_4, window_bounds = array<i64: 1, 128>}, {pipeline_mode = #tpu.pipeline_mode<synchronous>, transform_indices = @transform_5, window_bounds = array<i64: 8, 128>}]} {
    %c0 = arith.constant 0 : index
    %0 = memref.load %arg1[%c0] : memref<8xi32, #tpu.memory_space<smem>>
    %1 = arith.index_cast %0 : i32 to index
    %c0_0 = arith.constant 0 : index
    %2 = vector.load %arg2[%1, %c0_0] : memref<16x128xf32, #tpu.memory_space<vmem>>, vector<1x128xf32>
    %c0_1 = arith.constant 0 : index
    %c0_2 = arith.constant 0 : index
    %3 = vector.load %arg8[%c0_1, %c0_2] : memref<8x128xf32, #tpu.memory_space<vmem>>, vector<1x128xf32>
    tpu.vector_store %arg8[%c0_1, %c0_2], %2 {strides = array<i32>} : memref<8x128xf32, #tpu.memory_space<vmem>>, vector<1x128xf32>,
    %c1 = arith.constant 1 : index
    %4 = memref.load %arg1[%c1] : memref<8xi32, #tpu.memory_space<smem>>
    %5 = arith.index_cast %4 : i32 to index
    %c0_3 = arith.constant 0 : index
    %6 = vector.load %arg2[%5, %c0_3] : memref<16x128xf32, #tpu.memory_space<vmem>>, vector<1x128xf32>
    %c1_4 = arith.constant 1 : index
    %c0_5 = arith.constant 0 : index
    %7 = vector.load %arg8[%c1_4, %c0_5] : memref<8x128xf32, #tpu.memory_space<vmem>>, vector<1x128xf32>
    tpu.vector_store %arg8[%c1_4, %c0_5], %6 {strides = array<i32>} : memref<8x128xf32, #tpu.memory_space<vmem>>, vector<1x128xf32>,
    %c2 = arith.constant 2 : index
    %8 = memref.load %arg1[%c2] : memref<8xi32, #tpu.memory_space<smem>>
    %9 = arith.index_cast %8 : i32 to index
    %c0_6 = arith.constant 0 : index
    %10 = vector.load %arg2[%9, %c0_6] : memref<16x128xf32, #tpu.memory_space<vmem>>, vector<1x128xf32>
    %c2_7 = arith.constant 2 : index
    %c0_8 = arith.constant 0 : index
    %11 = vector.load %arg8[%c2_7, %c0_8] : memref<8x128xf32, #tpu.memory_space<vmem>>, vector<1x128xf32>
    tpu.vector_store %arg8[%c2_7, %c0_8], %10 {strides = array<i32>} : memref<8x128xf32, #tpu.memory_space<vmem>>, vector<1x128xf32>,
    %c3 = arith.constant 3 : index
    %12 = memref.load %arg1[%c3] : memref<8xi32, #tpu.memory_space<smem>>
    %13 = arith.index_cast %12 : i32 to index
    %c0_9 = arith.constant 0 : index
    %14 = vector.load %arg2[%13, %c0_9] : memref<16x128xf32, #tpu.memory_space<vmem>>, vector<1x128xf32>
    %c3_10 = arith.constant 3 : index
    %c0_11 = arith.constant 0 : index
    %15 = vector.load %arg8[%c3_10, %c0_11] : memref<8x128xf32, #tpu.memory_space<vmem>>, vector<1x128xf32>
    tpu.vector_store %arg8[%c3_10, %c0_11], %14 {strides = array<i32>} : memref<8x128xf32, #tpu.memory_space<vmem>>, vector<1x128xf32>,
    %c4 = arith.constant 4 : index
    %16 = memref.load %arg1[%c4] : memref<8xi32, #tpu.memory_space<smem>>
    %17 = arith.index_cast %16 : i32 to index
    %c0_12 = arith.constant 0 : index
    %18 = vector.load %arg2[%17, %c0_12] : memref<16x128xf32, #tpu.memory_space<vmem>>, vector<1x128xf32>
    %c4_13 = arith.constant 4 : index
    %c0_14 = arith.constant 0 : index
    %19 = vector.load %arg8[%c4_13, %c0_14] : memref<8x128xf32, #tpu.memory_space<vmem>>, vector<1x128xf32>
    tpu.vector_store %arg8[%c4_13, %c0_14], %18 {strides = array<i32>} : memref<8x128xf32, #tpu.memory_space<vmem>>, vector<1x128xf32>,
    %c5 = arith.constant 5 : index
    %20 = memref.load %arg1[%c5] : memref<8xi32, #tpu.memory_space<smem>>
    %21 = arith.index_cast %20 : i32 to index
    %c0_15 = arith.constant 0 : index
    %22 = vector.load %arg2[%21, %c0_15] : memref<16x128xf32, #tpu.memory_space<vmem>>, vector<1x128xf32>
    %c5_16 = arith.constant 5 : index
    %c0_17 = arith.constant 0 : index
    %23 = vector.load %arg8[%c5_16, %c0_17] : memref<8x128xf32, #tpu.memory_space<vmem>>, vector<1x128xf32>
    tpu.vector_store %arg8[%c5_16, %c0_17], %22 {strides = array<i32>} : memref<8x128xf32, #tpu.memory_space<vmem>>, vector<1x128xf32>,
    %c6 = arith.constant 6 : index
    %24 = memref.load %arg1[%c6] : memref<8xi32, #tpu.memory_space<smem>>
    %25 = arith.index_cast %24 : i32 to index
    %c0_18 = arith.constant 0 : index
    %26 = vector.load %arg2[%25, %c0_18] : memref<16x128xf32, #tpu.memory_space<vmem>>, vector<1x128xf32>
    %c6_19 = arith.constant 6 : index
    %c0_20 = arith.constant 0 : index
    %27 = vector.load %arg8[%c6_19, %c0_20] : memref<8x128xf32, #tpu.memory_space<vmem>>, vector<1x128xf32>
    tpu.vector_store %arg8[%c6_19, %c0_20], %26 {strides = array<i32>} : memref<8x128xf32, #tpu.memory_space<vmem>>, vector<1x128xf32>,
    %c7 = arith.constant 7 : index
    %28 = memref.load %arg1[%c7] : memref<8xi32, #tpu.memory_space<smem>>
    %29 = arith.index_cast %28 : i32 to index
    %c0_21 = arith.constant 0 : index
    %30 = vector.load %arg2[%29, %c0_21] : memref<16x128xf32, #tpu.memory_space<vmem>>, vector<1x128xf32>
    %c7_22 = arith.constant 7 : index
    %c0_23 = arith.constant 0 : index
    %31 = vector.load %arg8[%c7_22, %c0_23] : memref<8x128xf32, #tpu.memory_space<vmem>>, vector<1x128xf32>
    tpu.vector_store %arg8[%c7_22, %c0_23], %30 {strides = array<i32>} : memref<8x128xf32, #tpu.memory_space<vmem>>, vector<1x128xf32>,
    %c0_24 = arith.constant 0 : index
    %c0_25 = arith.constant 0 : index
    %32 = vector.load %arg8[%c0_24, %c0_25] : memref<8x128xf32, #tpu.memory_space<vmem>>, vector<8x128xf32>
    %c0_26 = arith.constant 0 : index
    %c0_27 = arith.constant 0 : index
    %33 = vector.load %arg3[%c0_26, %c0_27] : memref<512x128xf32, #tpu.memory_space<vmem>>, vector<512x128xf32>
    %cst = arith.constant dense<0.000000e+00> : vector<8x512xf32>
    %34 = tpu.matmul %32, %33, %cst {dimension_numbers = #tpu.dot_dimension_numbers<[1], [1], [0], [0], [0, 0, 1, 0], [], []>} : vector<8x128xf32>, vector<512x128xf32>, vector<8x512xf32> -> vector<8x512xf32>
    %c0_28 = arith.constant 0 : index
    %c0_29 = arith.constant 0 : index
    %35 = vector.load %arg4[%c0_28, %c0_29] : memref<1x512xf32, #tpu.memory_space<vmem>>, vector<1x512xf32>
    %36 = vector.broadcast %35 : vector<1x512xf32> to vector<8x512xf32>
    %37 = arith.addf %34, %36 : vector<8x512xf32>
    %38 = arith.negf %37 : vector<8x512xf32>
    %39 = math.exp %38 : vector<8x512xf32>
    %cst_30 = arith.constant 1.000000e+00 : f32
    %40 = vector.broadcast %cst_30 : f32 to vector<8x512xf32>
    %41 = arith.addf %40, %39 : vector<8x512xf32>
    %42 = arith.divf %40, %41 : vector<8x512xf32>
    %43 = arith.mulf %37, %42 : vector<8x512xf32>
    %c0_31 = arith.constant 0 : index
    %c0_32 = arith.constant 0 : index
    %44 = vector.load %arg5[%c0_31, %c0_32] : memref<512x128xf32, #tpu.memory_space<vmem>>, vector<512x128xf32>
    %cst_33 = arith.constant dense<0.000000e+00> : vector<8x128xf32>
    %45 = tpu.matmul %43, %44, %cst_33 {dimension_numbers = #tpu.dot_dimension_numbers<[1], [0], [0], [1], [0, 0, 1, 1], [], []>} : vector<8x512xf32>, vector<512x128xf32>, vector<8x128xf32> -> vector<8x128xf32>
    %c0_34 = arith.constant 0 : index
    %c0_35 = arith.constant 0 : index
    %46 = vector.load %arg6[%c0_34, %c0_35] : memref<1x128xf32, #tpu.memory_space<vmem>>, vector<1x128xf32>
    %47 = vector.broadcast %46 : vector<1x128xf32> to vector<8x128xf32>
    %48 = arith.addf %45, %47 : vector<8x128xf32>
    %c0_36 = arith.constant 0 : index
    %c0_37 = arith.constant 0 : index
    %49 = vector.load %arg7[%c0_36, %c0_37] : memref<8x128xf32, #tpu.memory_space<vmem>>, vector<8x128xf32>
    tpu.vector_store %arg7[%c0_36, %c0_37], %48 {strides = array<i32>} : memref<8x128xf32, #tpu.memory_space<vmem>>, vector<8x128xf32>,
    return
  }
  func.func @transform_0(%arg0: i32, %arg1: memref<8xi32, #tpu.memory_space<smem>>) -> (i32, i32) {
    %c0_i32 = arith.constant 0 : i32
    %c0_i32_0 = arith.constant 0 : i32
    %c0_i32_1 = arith.constant 0 : i32
    return %c0_i32, %c0_i32_0 : i32, i32
  }
  func.func @transform_1(%arg0: i32, %arg1: memref<8xi32, #tpu.memory_space<smem>>) -> (i32, i32) {
    %c0_i32 = arith.constant 0 : i32
    %c0_i32_0 = arith.constant 0 : i32
    return %arg0, %c0_i32 : i32, i32
  }
  func.func @transform_2(%arg0: i32, %arg1: memref<8xi32, #tpu.memory_space<smem>>) -> (i32, i32) {
    %c0_i32 = arith.constant 0 : i32
    %c0_i32_0 = arith.constant 0 : i32
    return %c0_i32, %arg0 : i32, i32
  }
  func.func @transform_3(%arg0: i32, %arg1: memref<8xi32, #tpu.memory_space<smem>>) -> (i32, i32) {
    %c0_i32 = arith.constant 0 : i32
    %c0_i32_0 = arith.constant 0 : i32
    return %arg0, %c0_i32 : i32, i32
  }
  func.func @transform_4(%arg0: i32, %arg1: memref<8xi32, #tpu.memory_space<smem>>) -> (i32, i32) {
    %c0_i32 = arith.constant 0 : i32
    %c0_i32_0 = arith.constant 0 : i32
    %c0_i32_1 = arith.constant 0 : i32
    return %c0_i32, %c0_i32_0 : i32, i32
  }
  func.func @transform_5(%arg0: i32, %arg1: memref<8xi32, #tpu.memory_space<smem>>) -> (i32, i32) {
    %c0_i32 = arith.constant 0 : i32
    %c0_i32_0 = arith.constant 0 : i32
    %c0_i32_1 = arith.constant 0 : i32
    return %c0_i32, %c0_i32_0 : i32, i32
  }
}

</mosaic_0001>

<bundles_post_ra>
// kernel: tpu_custom_call.1
= control target key start
LH: loop header
LB: loop body
LE: loop exit
PB: predicated region body
PF: predicated region fallthrough
CT: control target
= control target key end

     0   :  { %s861_s21 = smov [#allocation4]   ;;  %s948_s0 = inlined_call_operand.hbm [shape: s32[8], index: 0, kind: input, shape index: {}]   ;;  %s949_s1 = inlined_call_operand.hbm [shape: f32[16,128], index: 1, kind: input, shape index: {}]   ;;  %s950_s2 = inlined_call_operand.hbm [shape: f32[512,128], index: 2, kind: input, shape index: {}]   ;;  %s951_s3 = inlined_call_operand.vmem [shape: f32[1,512], index: 3, kind: input, shape index: {}]   ;;  %s952_s4 = inlined_call_operand.hbm [shape: f32[512,128], index: 4, kind: input, shape index: {}]   ;;  %s953_s5 = inlined_call_operand.vmem [shape: f32[1,128], index: 5, kind: input, shape index: {}]   ;;  %s954_s6 = inlined_call_operand.hbm [shape: f32[8,128], index: 6, kind: output, shape index: {}]  }
   0x1   :  { %12 = dma.hbm_to_smem %s948_s0, 16, %s861_s21, [#allocation3] }
   0x2   :  { %853 = dma.done.wait [#allocation3], 16 }
   0x3   :  { %854 = vsyncadd [#allocation3], 4294967280 }
   0x4   :  { %14 = sfence }
   0x5   :  { %15 = vsyncpa [#allocation6], 0 }
   0x6   :  { %16 = vsyncpa [#allocation9], 0 }
   0x7   :  { %17 = vsyncpa [#allocation7], 0  ;;  %s862_s24 = smov [#allocation8]   ;;  %s863_s26 = smov [#allocation5]  }
   0x8   :  { %s35_s25 = sshll.u32 %s862_s24, 4  ;;  %s23_s27 = sshll.u32 %s863_s26, 4  ;;  %s36_s25 = int_to_ptr.vmem [resolvable:$true] %s35_s25  ;;  %s24_s27 = int_to_ptr.vmem [resolvable:$true] %s23_s27 }
   0x9   :  { %s781_s28 = scalar_lea.vmem %s36_s25, 8192  ;;  %p786_p1 = scmp.lt.s32.totalorder %s36_s25, %s36_s25 }
   0xa   :  { %p782_p0 = scmp.ne.s32.totalorder %s36_s25, %s781_s28  ;;  %p787_p2 = scmp.lt.s32.totalorder %s781_s28, %s781_s28 }
   0xc   :  { %p788_p3 = por %p787_p2, %p786_p1 }
   0xe   :  { %p789_p4 = pnand %p788_p3, %p782_p0 }
  0x10   :  { %792 = shalt.err (!%p789_p4)
}
  0x11   :  { %s864_s0 = smov 128   ;;  %s865_s29 = smov 8  }
  0x12   :  { %41 = dma.hbm_to_vmem [thread:$0]  %s950_s2, 8192, %s36_s25, [#allocation9], %s864_s0, %s864_s0, %s865_s29  }
  0x13   :  { %s801_s8 = scalar_lea.vmem %s24_s27, 256  ;;  %p806_p6 = scmp.lt.s32.totalorder %s24_s27, %s24_s27 }
  0x14   :  { %p802_p5 = scmp.ne.s32.totalorder %s24_s27, %s801_s8  ;;  %p807_p7 = scmp.lt.s32.totalorder %s801_s8, %s801_s8 }
  0x16   :  { %p808_p8 = por %p807_p7, %p806_p6 }
  0x18   :  { %p809_p9 = pnand %p808_p8, %p802_p5 }
  0x1a   :  { %812 = shalt.err (!%p809_p9)
}
  0x1b   :  { %29 = dma.hbm_to_vmem [thread:$0]  %s949_s1, 256, %s24_s27, [#allocation6], %s864_s0, %s864_s0, %s865_s29  }
  0x1c   :  { %s866_s11 = smov [#allocation10]  }
  0x1d   :  { %s49_s12 = sshll.u32 %s866_s11, 4  ;;  %s50_s12 = int_to_ptr.vmem [resolvable:$true] %s49_s12 }
  0x1e   :  { %s821_s13 = scalar_lea.vmem %s50_s12, 8192  ;;  %p826_p11 = scmp.lt.s32.totalorder %s50_s12, %s50_s12 }
  0x1f   :  { %p822_p10 = scmp.ne.s32.totalorder %s50_s12, %s821_s13  ;;  %p827_p12 = scmp.lt.s32.totalorder %s821_s13, %s821_s13 }
  0x21   :  { %p828_p13 = por %p827_p12, %p826_p11 }
  0x23   :  { %p829_p0 = pnand %p828_p13, %p822_p10 }
  0x25   :  { %832 = shalt.err (!%p829_p0)
}
  0x26   :  { %55 = dma.hbm_to_vmem [thread:$0]  %s952_s4, 8192, %s50_s12, [#allocation9], %s864_s0, %s864_s0, %s865_s29  }
  0x27   :  { %855 = dma.done.wait [#allocation6], 256  }
  0x28   :  { %856 = vsyncadd [#allocation6], 4294967040 }
  0x29   :  { %857 = dma.done.wait [#allocation9], 16384  }
  0x2a   :  { %858 = vsyncadd [#allocation9], 4294950912  ;;  %v131_v0 = vld [vmem:[#allocation8 + $0xf8] sm:$0xff]  ;;  %v130_v4 = vld [vmem:[#allocation8 + $0xf0] sm:$0xff]  ;;  %s915_s1 = sld [smem:[#allocation4]]  ;;  %s867_s7 = smov [#allocation11]  }
  0x2b   :  { %v163_v1 = vld [vmem:[#allocation8 + $0x1f8] sm:$0xff]  ;;  %604 = vmatprep.subr.mxu0 %v131_v0  ;;  %v162_v5 = vld [vmem:[#allocation8 + $0x1f0] sm:$0xff]  ;;  %v129_v8 = vld [vmem:[#allocation8 + $0xe8] sm:$0xff]  ;;  %s917_s4 = sld [smem:[#allocation4 + $0x1]]  ;;  %s574_s8 = sshll.u32 %s867_s7, 4  ;;  %s575_s8 = int_to_ptr.vmem [resolvable:$true] %s574_s8 }
  0x2c   :  { %v115_v2 = vld [vmem:[#allocation8 + $0x78] sm:$0xff]  ;;  %638 = vmatprep.subr.mxu1 %v163_v1  ;;  %v114_v6 = vld [vmem:[#allocation8 + $0x70] sm:$0xff]  ;;  %v161_v9 = vld [vmem:[#allocation8 + $0x1e8] sm:$0xff]  ;;  %s919_s15 = sld [smem:[#allocation4 + $0x2]]  ;;  %s833_s9 = scalar_lea.vmem %s575_s8, 128 }
  0x2d   :  { %v147_v3 = vld [vmem:[#allocation8 + $0x178] sm:$0xff]  ;;  %605 = vmatpush3.xpose.msra.mxu0 %v115_v2  ;;  %v146_v7 = vld [vmem:[#allocation8 + $0x170] sm:$0xff]  ;;  %v113_v10 = vld [vmem:[#allocation8 + $0x68] sm:$0xff]  ;;  %s921_s16 = sld [smem:[#allocation4 + $0x3]]  ;;  %p834_p1 = scmp.ne.s32.totalorder %s575_s8, %s833_s9 }
  0x2e   :  { %639 = vmatpush3.xpose.msra.mxu1 %v147_v3  ;;  %606 = vmatprep.subr.mxu0 %v130_v4  ;;  %v145_v11 = vld [vmem:[#allocation8 + $0x168] sm:$0xff]  ;;  %v128_v12 = vld [vmem:[#allocation8 + $0xe0] sm:$0xff]  ;;  %s923_s17 = sld [smem:[#allocation4 + $0x4]]  ;;  %v127_v16 = vld [vmem:[#allocation8 + $0xd8] sm:$0xff]  ;;  %p838_p2 = scmp.lt.s32.totalorder %s575_s8, %s575_s8 }
  0x2f   :  { %640 = vmatprep.subr.mxu1 %v162_v5  ;;  %v160_v13 = vld [vmem:[#allocation8 + $0x1e0] sm:$0xff]  ;;  %s925_s18 = sld [smem:[#allocation4 + $0x5]]  ;;  %v159_v17 = vld [vmem:[#allocation8 + $0x1d8] sm:$0xff]  ;;  %v126_v20 = vld [vmem:[#allocation8 + $0xd0] sm:$0xff]  ;;  %p839_p3 = scmp.lt.s32.totalorder %s833_s9, %s833_s9 }
  0x30   :  { %v112_v14 = vld [vmem:[#allocation8 + $0x60] sm:$0xff]  ;;  %s927_s19 = sld [smem:[#allocation4 + $0x6]]  ;;  %v111_v18 = vld [vmem:[#allocation8 + $0x58] sm:$0xff]  ;;  %v158_v21 = vld [vmem:[#allocation8 + $0x1d0] sm:$0xff]  ;;  %s68_s21 = scalar_lea.vmem [#allocation5], %s915_s1 }
  0x31   :  { %607 = vmatpush3.xpose.msra.mxu0 %v114_v6  ;;  %v144_v15 = vld [vmem:[#allocation8 + $0x160] sm:$0xff]  ;;  %s929_s20 = sld [smem:[#allocation4 + $0x7]]  ;;  %v143_v19 = vld [vmem:[#allocation8 + $0x158] sm:$0xff]  ;;  %v110_v22 = vld [vmem:[#allocation8 + $0x50] sm:$0xff]  ;;  %s72_s22 = scalar_lea.vmem [#allocation5], %s917_s4 }
  0x32   :  { %641 = vmatpush3.xpose.msra.mxu1 %v146_v7  ;;  %608 = vmatprep.subr.mxu0 %v129_v8  ;;  %v142_v23 = vld [vmem:[#allocation8 + $0x150] sm:$0xff]  ;;  %v125_v24 = vld [vmem:[#allocation8 + $0xc8] sm:$0xff]  ;;  %s76_s23 = scalar_lea.vmem [#allocation5], %s919_s15  ;;  %v124_v36 = vld [vmem:[#allocation8 + $0xc0] sm:$0xff]  ;;  %p840_p4 = por %p839_p3, %p838_p2 }
  0x33   :  { %642 = vmatprep.subr.mxu1 %v161_v9  ;;  %v157_v25 = vld [vmem:[#allocation8 + $0x1c8] sm:$0xff]  ;;  %s80_s24 = scalar_lea.vmem [#allocation5], %s921_s16  ;;  %v156_v37 = vld [vmem:[#allocation8 + $0x1c0] sm:$0xff]  ;;  %v123_v40 = vld [vmem:[#allocation8 + $0xb8] sm:$0xff] }
  0x34   :  { %v109_v26 = vld [vmem:[#allocation8 + $0x48] sm:$0xff]  ;;  %s84_s25 = scalar_lea.vmem [#allocation5], %s923_s17  ;;  %v108_v38 = vld [vmem:[#allocation8 + $0x40] sm:$0xff]  ;;  %v155_v41 = vld [vmem:[#allocation8 + $0x1b8] sm:$0xff]  ;;  %p841_p5 = pnand %p840_p4, %p834_p1 }
  0x35   :  { %609 = vmatpush3.xpose.msra.mxu0 %v113_v10  ;;  %v141_v27 = vld [vmem:[#allocation8 + $0x148] sm:$0xff]  ;;  %s88_s26 = scalar_lea.vmem [#allocation5], %s925_s18  ;;  %v140_v39 = vld [vmem:[#allocation8 + $0x140] sm:$0xff]  ;;  %v107_v42 = vld [vmem:[#allocation8 + $0x38] sm:$0xff] }
  0x36   :  { %643 = vmatpush3.xpose.msra.mxu1 %v145_v11  ;;  %610 = vmatprep.subr.mxu0 %v128_v12  ;;  %v69_v28 = vld [vmem:[%s68_s21] sm:$0x1]  ;;  %s92_s27 = scalar_lea.vmem [#allocation5], %s927_s19  ;;  %v139_v43 = vld [vmem:[#allocation8 + $0x138] sm:$0xff]  ;;  %v122_v45 = vld [vmem:[#allocation8 + $0xb0] sm:$0xff] }
  0x37   :  { %644 = vmatprep.subr.mxu1 %v160_v13  ;;  %v73_v29 = vld [vmem:[%s72_s22] sm:$0x1]  ;;  %70 = vst [vmem:[#allocation2] sm:$0x1] %v69_v28  ;;  %s96_s28 = scalar_lea.vmem [#allocation5], %s929_s20  ;;  %v154_v46 = vld [vmem:[#allocation8 + $0x1b0] sm:$0xff] }
  0x38   :  { %74 = vst [vmem:[#allocation2 + $0x1] sm:$0x1] %v73_v29  ;;  %v77_v30 = vld [vmem:[%s76_s23] sm:$0x1]  ;;  %v106_v47 = vld [vmem:[#allocation8 + $0x30] sm:$0xff]  ;;  %v120_v53 = vld [vmem:[#allocation8 + $0xa0] sm:$0xff] }
  0x39   :  { %611 = vmatpush3.xpose.msra.mxu0 %v112_v14  ;;  %v81_v31 = vld [vmem:[%s80_s24] sm:$0x1]  ;;  %78 = vst [vmem:[#allocation2 + $0x2] sm:$0x1] %v77_v30  ;;  %v138_v48 = vld [vmem:[#allocation8 + $0x130] sm:$0xff]  ;;  %v152_v54 = vld [vmem:[#allocation8 + $0x1a0] sm:$0xff] }
  0x3a   :  { %645 = vmatpush3.xpose.msra.mxu1 %v144_v15  ;;  %612 = vmatprep.subr.mxu0 %v127_v16  ;;  %v85_v32 = vld [vmem:[%s84_s25] sm:$0x1]  ;;  %82 = vst [vmem:[#allocation2 + $0x3] sm:$0x1] %v81_v31  ;;  %v104_v55 = vld [vmem:[#allocation8 + $0x20] sm:$0xff]  ;;  %v119_v57 = vld [vmem:[#allocation8 + $0x98] sm:$0xff] }
  0x3b   :  { %646 = vmatprep.subr.mxu1 %v159_v17  ;;  %86 = vst [vmem:[#allocation2 + $0x4] sm:$0x1] %v85_v32  ;;  %v89_v33 = vld [vmem:[%s88_s26] sm:$0x1]  ;;  %v136_v56 = vld [vmem:[#allocation8 + $0x120] sm:$0xff]  ;;  %v151_v58 = vld [vmem:[#allocation8 + $0x198] sm:$0xff] }
  0x3c   :  { %v93_v34 = vld [vmem:[%s92_s27] sm:$0x1]  ;;  %90 = vst [vmem:[#allocation2 + $0x5] sm:$0x1] %v89_v33  ;;  %v103_v59 = vld [vmem:[#allocation8 + $0x18] sm:$0xff]  ;;  %v118_v61 = vld [vmem:[#allocation8 + $0x90] sm:$0xff] }
  0x3d   :  { %613 = vmatpush3.xpose.msra.mxu0 %v111_v18  ;;  %v97_v35 = vld [vmem:[%s96_s28] sm:$0x1]  ;;  %94 = vst [vmem:[#allocation2 + $0x6] sm:$0x1] %v93_v34  ;;  %v135_v60 = vld [vmem:[#allocation8 + $0x118] sm:$0xff]  ;;  %v150_v62 = vld [vmem:[#allocation8 + $0x190] sm:$0xff] }
  0x3e   :  { %647 = vmatpush3.xpose.msra.mxu1 %v143_v19  ;;  %614 = vmatprep.subr.mxu0 %v126_v20  ;;  %98 = vst [vmem:[#allocation2 + $0x7] sm:$0x1] %v97_v35  ;;  %v121_v49 = vld [vmem:[#allocation8 + $0xa8] sm:$0xff]  ;;  %v102_v63 = vld [vmem:[#allocation8 + $0x10] sm:$0xff]  ;;  %v116_v5 = vld [vmem:[#allocation8 + $0x80] sm:$0xff] }
  0x3f   :  { %648 = vmatprep.subr.mxu1 %v158_v21  ;;  %v153_v50 = vld [vmem:[#allocation8 + $0x1a8] sm:$0xff]  ;;  %v134_v0 = vld [vmem:[#allocation8 + $0x110] sm:$0xff]  ;;  %v148_v6 = vld [vmem:[#allocation8 + $0x180] sm:$0xff] }
  0x40   :  { %v105_v51 = vld [vmem:[#allocation8 + $0x28] sm:$0xff]  ;;  %v100_v7 = vld [vmem:[#allocation8] sm:$0xff]  ;;  %v387_v9 = vld [vmem:[#allocation10 + $0xf8] sm:$0xff] }
  0x41   :  { %615 = vmatpush3.xpose.msra.mxu0 %v110_v22  ;;  %v137_v52 = vld [vmem:[#allocation8 + $0x128] sm:$0xff]  ;;  %v132_v8 = vld [vmem:[#allocation8 + $0x100] sm:$0xff]  ;;  %v419_v10 = vld [vmem:[#allocation10 + $0x1f8] sm:$0xff] }
  0x42   :  { %649 = vmatpush3.xpose.msra.mxu1 %v142_v23  ;;  %616 = vmatprep.subr.mxu0 %v125_v24  ;;  %v117_v1 = vld [vmem:[#allocation8 + $0x88] sm:$0xff]  ;;  %v371_v11 = vld [vmem:[#allocation10 + $0x78] sm:$0xff]  ;;  %v386_v13 = vld [vmem:[#allocation10 + $0xf0] sm:$0xff] }
  0x43   :  { %650 = vmatprep.subr.mxu1 %v157_v25  ;;  %v149_v2 = vld [vmem:[#allocation8 + $0x188] sm:$0xff]  ;;  %v403_v12 = vld [vmem:[#allocation10 + $0x178] sm:$0xff]  ;;  %v418_v14 = vld [vmem:[#allocation10 + $0x1f0] sm:$0xff] }
  0x44   :  { %v101_v3 = vld [vmem:[#allocation8 + $0x8] sm:$0xff]  ;;  %v370_v15 = vld [vmem:[#allocation10 + $0x70] sm:$0xff]  ;;  %v384_v21 = vld [vmem:[#allocation10 + $0xe0] sm:$0xff] }
  0x45   :  { %617 = vmatpush3.xpose.msra.mxu0 %v109_v26  ;;  %v99_v44 = vld [vmem:[#allocation2] sm:$0xff]  ;;  %v402_v16 = vld [vmem:[#allocation10 + $0x170] sm:$0xff]  ;;  %v416_v22 = vld [vmem:[#allocation10 + $0x1e0] sm:$0xff] }
  0x46   :  { %651 = vmatpush3.xpose.msra.mxu1 %v141_v27  ;;  %618 = vmatprep.subr.mxu0 %v124_v36  ;;  %v133_v4 = vld [vmem:[#allocation8 + $0x108] sm:$0xff]  ;;  %v368_v23 = vld [vmem:[#allocation10 + $0x60] sm:$0xff]  ;;  %v383_v25 = vld [vmem:[#allocation10 + $0xd8] sm:$0xff] }
  0x47   :  { %652 = vmatprep.subr.mxu1 %v156_v37  ;;  %636 = vmatprep.mubr.f32.mxu0 %v99_v44  ;;  %v385_v17 = vld [vmem:[#allocation10 + $0xe8] sm:$0xff]  ;;  %v400_v24 = vld [vmem:[#allocation10 + $0x160] sm:$0xff]  ;;  %v415_v26 = vld [vmem:[#allocation10 + $0x1d8] sm:$0xff] }
  0x48   :  { %670 = vmatprep.mubr.f32.mxu1 %v99_v44  ;;  %v417_v18 = vld [vmem:[#allocation10 + $0x1e8] sm:$0xff]  ;;  %v367_v27 = vld [vmem:[#allocation10 + $0x58] sm:$0xff]  ;;  %v382_v29 = vld [vmem:[#allocation10 + $0xd0] sm:$0xff] }
  0x49   :  { %619 = vmatpush3.xpose.msra.mxu0 %v108_v38  ;;  %v369_v19 = vld [vmem:[#allocation10 + $0x68] sm:$0xff]  ;;  %v399_v28 = vld [vmem:[#allocation10 + $0x158] sm:$0xff]  ;;  %v414_v30 = vld [vmem:[#allocation10 + $0x1d0] sm:$0xff] }
  0x4a   :  { %653 = vmatpush3.xpose.msra.mxu1 %v140_v39  ;;  %620 = vmatprep.subr.mxu0 %v123_v40  ;;  %v401_v20 = vld [vmem:[#allocation10 + $0x168] sm:$0xff]  ;;  %v366_v31 = vld [vmem:[#allocation10 + $0x50] sm:$0xff]  ;;  %v380_v37 = vld [vmem:[#allocation10 + $0xc0] sm:$0xff] }
  0x4b   :  { %654 = vmatprep.subr.mxu1 %v155_v41  ;;  %v398_v32 = vld [vmem:[#allocation10 + $0x150] sm:$0xff]  ;;  %v381_v33 = vld [vmem:[#allocation10 + $0xc8] sm:$0xff]  ;;  %v412_v38 = vld [vmem:[#allocation10 + $0x1c0] sm:$0xff] }
  0x4c   :  { %v413_v34 = vld [vmem:[#allocation10 + $0x1c8] sm:$0xff]  ;;  %v364_v39 = vld [vmem:[#allocation10 + $0x40] sm:$0xff]  ;;  %v379_v41 = vld [vmem:[#allocation10 + $0xb8] sm:$0xff] }
  0x4d   :  { %621 = vmatpush3.xpose.msra.mxu0 %v107_v42  ;;  %v365_v35 = vld [vmem:[#allocation10 + $0x48] sm:$0xff]  ;;  %v396_v40 = vld [vmem:[#allocation10 + $0x140] sm:$0xff]  ;;  %v411_v42 = vld [vmem:[#allocation10 + $0x1b8] sm:$0xff] }
  0x4e   :  { %655 = vmatpush3.xpose.msra.mxu1 %v139_v43  ;;  %622 = vmatprep.subr.mxu0 %v122_v45  ;;  %v397_v36 = vld [vmem:[#allocation10 + $0x148] sm:$0xff]  ;;  %v363_v43 = vld [vmem:[#allocation10 + $0x38] sm:$0xff]  ;;  %v378_v45 = vld [vmem:[#allocation10 + $0xb0] sm:$0xff] }
  0x4f   :  { %656 = vmatprep.subr.mxu1 %v154_v46  ;;  %v410_v46 = vld [vmem:[#allocation10 + $0x1b0] sm:$0xff] }
  0x51   :  { %623 = vmatpush3.xpose.msra.mxu0 %v106_v47  ;;  %v362_v47 = vld [vmem:[#allocation10 + $0x30] sm:$0xff] }
  0x52   :  { %657 = vmatpush3.xpose.msra.mxu1 %v138_v48  ;;  %624 = vmatprep.subr.mxu0 %v121_v49  ;;  %v394_v48 = vld [vmem:[#allocation10 + $0x130] sm:$0xff]  ;;  %v377_v49 = vld [vmem:[#allocation10 + $0xa8] sm:$0xff] }
  0x53   :  { %658 = vmatprep.subr.mxu1 %v153_v50  ;;  %v409_v50 = vld [vmem:[#allocation10 + $0x1a8] sm:$0xff] }
  0x55   :  { %625 = vmatpush3.xpose.msra.mxu0 %v105_v51  ;;  %v361_v51 = vld [vmem:[#allocation10 + $0x28] sm:$0xff] }
  0x56   :  { %659 = vmatpush3.xpose.msra.mxu1 %v137_v52  ;;  %626 = vmatprep.subr.mxu0 %v120_v53  ;;  %v393_v52 = vld [vmem:[#allocation10 + $0x128] sm:$0xff]  ;;  %v376_v53 = vld [vmem:[#allocation10 + $0xa0] sm:$0xff] }
  0x57   :  { %660 = vmatprep.subr.mxu1 %v152_v54  ;;  %v408_v54 = vld [vmem:[#allocation10 + $0x1a0] sm:$0xff] }
  0x59   :  { %627 = vmatpush3.xpose.msra.mxu0 %v104_v55  ;;  %v360_v55 = vld [vmem:[#allocation10 + $0x20] sm:$0xff] }
  0x5a   :  { %661 = vmatpush3.xpose.msra.mxu1 %v136_v56  ;;  %628 = vmatprep.subr.mxu0 %v119_v57  ;;  %v392_v56 = vld [vmem:[#allocation10 + $0x120] sm:$0xff]  ;;  %v375_v57 = vld [vmem:[#allocation10 + $0x98] sm:$0xff] }
  0x5b   :  { %662 = vmatprep.subr.mxu1 %v151_v58  ;;  %v407_v58 = vld [vmem:[#allocation10 + $0x198] sm:$0xff] }
  0x5d   :  { %629 = vmatpush3.xpose.msra.mxu0 %v103_v59  ;;  %v359_v59 = vld [vmem:[#allocation10 + $0x18] sm:$0xff] }
  0x5e   :  { %663 = vmatpush3.xpose.msra.mxu1 %v135_v60  ;;  %630 = vmatprep.subr.mxu0 %v118_v61  ;;  %v391_v60 = vld [vmem:[#allocation10 + $0x118] sm:$0xff]  ;;  %v374_v61 = vld [vmem:[#allocation10 + $0x90] sm:$0xff] }
  0x5f   :  { %664 = vmatprep.subr.mxu1 %v150_v62  ;;  %v406_v62 = vld [vmem:[#allocation10 + $0x190] sm:$0xff] }
  0x61   :  { %631 = vmatpush3.xpose.msra.mxu0 %v102_v63  ;;  %v358_v63 = vld [vmem:[#allocation10 + $0x10] sm:$0xff] }
  0x62   :  { %665 = vmatpush3.xpose.msra.mxu1 %v134_v0  ;;  %632 = vmatprep.subr.mxu0 %v117_v1  ;;  %v390_v0 = vld [vmem:[#allocation10 + $0x110] sm:$0xff]  ;;  %v373_v1 = vld [vmem:[#allocation10 + $0x88] sm:$0xff] }
  0x63   :  { %666 = vmatprep.subr.mxu1 %v149_v2  ;;  %v405_v2 = vld [vmem:[#allocation10 + $0x188] sm:$0xff] }
  0x65   :  { %633 = vmatpush3.xpose.msra.mxu0 %v101_v3  ;;  %v357_v3 = vld [vmem:[#allocation10 + $0x8] sm:$0xff] }
  0x66   :  { %667 = vmatpush3.xpose.msra.mxu1 %v133_v4  ;;  %634 = vmatprep.subr.mxu0 %v116_v5  ;;  %v389_v4 = vld [vmem:[#allocation10 + $0x108] sm:$0xff]  ;;  %v372_v5 = vld [vmem:[#allocation10 + $0x80] sm:$0xff] }
  0x67   :  { %668 = vmatprep.subr.mxu1 %v148_v6  ;;  %v404_v6 = vld [vmem:[#allocation10 + $0x180] sm:$0xff] }
  0x69   :  { %635 = vmatpush3.xpose.msra.mxu0 %v100_v7  ;;  %v356_v7 = vld [vmem:[#allocation10] sm:$0xff] }
  0x6a   :  { %669 = vmatpush3.xpose.msra.mxu1 %v132_v8  ;;  %672 = vmatprep.subr.mxu0 %v387_v9  ;;  %v388_v8 = vld [vmem:[#allocation10 + $0x100] sm:$0xff]  ;;  %v166_v9 = vlaneseq }
  0x6b   :  { %707 = vmatprep.subr.mxu1 %v419_v10 }
  0x6c   :  { %637 = vmatmul.mubr.f32.vlgmr.msra.gmra.mxu0 %v99_v44  ;;  %v167_v10 = vshrl.u32 %v166_v9, 7 }
  0x6d   :  { %671 = vmatmul.mubr.f32.vlgmr.msra.gmra.mxu1 %v99_v44  ;;  %673 = vmatpush3.msra.mxu0 %v371_v11  ;;  %v395_v44 = vld [vmem:[#allocation10 + $0x138] sm:$0xff] }
  0x6e   :  { %708 = vmatpush3.msra.mxu1 %v403_v12  ;;  %674 = vmatprep.subr.mxu0 %v386_v13  ;;  %v168_v11 = vsub.s32 0, %v167_v10  ;;  %v176_v12 = vsub.s32 2, %v167_v10  ;;  %v164_v13 = vld [vmem:[%s951_s3] sm:$0xf] }
  0x6f   :  { %709 = vmatprep.subr.mxu1 %v418_v14  ;;  %675 = vmatpush3.msra.mxu0 %v370_v15  ;;  %v172_v14 = vsub.s32 1, %v167_v10  ;;  %v180_v15 = vsub.s32 3, %v167_v10 }
  0x70   :  { %710 = vmatpush3.msra.mxu1 %v402_v16  ;;  %676 = vmatprep.subr.mxu0 %v385_v17  ;;  %v169_v16 = vrot.slane %v164_v13, %v168_v11  ;;  %v177_v17 = vrot.slane %v164_v13, %v176_v12 }
  0x71   :  { %711 = vmatprep.subr.mxu1 %v417_v18  ;;  %677 = vmatpush3.msra.mxu0 %v369_v19  ;;  %v173_v18 = vrot.slane %v164_v13, %v172_v14  ;;  %v181_v19 = vrot.slane %v164_v13, %v180_v15 }
  0x72   :  { %712 = vmatpush3.msra.mxu1 %v401_v20  ;;  %678 = vmatprep.subr.mxu0 %v384_v21 }
  0x73   :  { %713 = vmatprep.subr.mxu1 %v416_v22  ;;  %679 = vmatpush3.msra.mxu0 %v368_v23 }
  0x74   :  { %714 = vmatpush3.msra.mxu1 %v400_v24  ;;  %680 = vmatprep.subr.mxu0 %v383_v25 }
  0x75   :  { %715 = vmatprep.subr.mxu1 %v415_v26  ;;  %681 = vmatpush3.msra.mxu0 %v367_v27 }
  0x76   :  { %716 = vmatpush3.msra.mxu1 %v399_v28  ;;  %682 = vmatprep.subr.mxu0 %v382_v29 }
  0x77   :  { %717 = vmatprep.subr.mxu1 %v414_v30  ;;  %683 = vmatpush3.msra.mxu0 %v366_v31 }
  0x78   :  { %718 = vmatpush3.msra.mxu1 %v398_v32  ;;  %684 = vmatprep.subr.mxu0 %v381_v33 }
  0x79   :  { %719 = vmatprep.subr.mxu1 %v413_v34  ;;  %685 = vmatpush3.msra.mxu0 %v365_v35 }
  0x7a   :  { %720 = vmatpush3.msra.mxu1 %v397_v36  ;;  %686 = vmatprep.subr.mxu0 %v380_v37 }
  0x7b   :  { %721 = vmatprep.subr.mxu1 %v412_v38  ;;  %687 = vmatpush3.msra.mxu0 %v364_v39 }
  0x7c   :  { %722 = vmatpush3.msra.mxu1 %v396_v40  ;;  %688 = vmatprep.subr.mxu0 %v379_v41 }
  0x7d   :  { %723 = vmatprep.subr.mxu1 %v411_v42  ;;  %689 = vmatpush3.msra.mxu0 %v363_v43 }
  0x7e   :  { %724 = vmatpush3.msra.mxu1 %v395_v44  ;;  %690 = vmatprep.subr.mxu0 %v378_v45 }
  0x7f   :  { %725 = vmatprep.subr.mxu1 %v410_v46  ;;  %691 = vmatpush3.msra.mxu0 %v362_v47 }
  0x80   :  { %726 = vmatpush3.msra.mxu1 %v394_v48  ;;  %692 = vmatprep.subr.mxu0 %v377_v49 }
  0x81   :  { %727 = vmatprep.subr.mxu1 %v409_v50  ;;  %693 = vmatpush3.msra.mxu0 %v361_v51  ;;  %v603_v50 = vld [vmem:[%s953_s5] ss:$0 sm:$0xff] }
  0x82   :  { %728 = vmatpush3.msra.mxu1 %v393_v52  ;;  %694 = vmatprep.subr.mxu0 %v376_v53 }
  0x83   :  { %729 = vmatprep.subr.mxu1 %v408_v54  ;;  %695 = vmatpush3.msra.mxu0 %v360_v55 }
  0x84   :  { %730 = vmatpush3.msra.mxu1 %v392_v56  ;;  %696 = vmatprep.subr.mxu0 %v375_v57 }
  0x85   :  { %731 = vmatprep.subr.mxu1 %v407_v58  ;;  %697 = vmatpush3.msra.mxu0 %v359_v59 }
  0x86   :  { %732 = vmatpush3.msra.mxu1 %v391_v60  ;;  %698 = vmatprep.subr.mxu0 %v374_v61 }
  0x87   :  { %733 = vmatprep.subr.mxu1 %v406_v62  ;;  %699 = vmatpush3.msra.mxu0 %v358_v63 }
  0x88   :  { %734 = vmatpush3.msra.mxu1 %v390_v0  ;;  %700 = vmatprep.subr.mxu0 %v373_v1 }
  0x89   :  { %735 = vmatprep.subr.mxu1 %v405_v2  ;;  %701 = vmatpush3.msra.mxu0 %v357_v3 }
  0x8a   :  { %736 = vmatpush3.msra.mxu1 %v389_v4  ;;  %702 = vmatprep.subr.mxu0 %v372_v5 }
  0x8b   :  { %737 = vmatprep.subr.mxu1 %v404_v6  ;;  %703 = vmatpush3.msra.mxu0 %v356_v7 }
  0x8c   :  { %738 = vmatpush3.msra.mxu1 %v388_v8 }
 0x12c   :  { %v252_v20 = vpop.f32.mrf.mxu0 }
 0x12d   :  { %v323_v21 = vpop.f32.mrf.mxu1  ;;  %v253_v22 = vadd.f32 %v252_v20, %v169_v16 }
 0x12e   :  { %v324_v23 = vadd.f32 %v323_v21, %v177_v17  ;;  %v254_v24 = vpop.f32.mrf.mxu0 }
 0x12f   :  { %v325_v25 = vpop.f32.mrf.mxu1  ;;  %v599_v26 = vmul.f32 -1.442695, %v253_v22  ;;  %v255_v28 = vadd.f32 %v254_v24, %v173_v18 }
 0x130   :  { %v601_v27 = vmul.f32 -1.442695, %v324_v23  ;;  %v326_v29 = vadd.f32 %v325_v25, %v181_v19 }
 0x131   :  { %749 = vpow2.f32 %v599_v26  ;;  %v600_v30 = vmul.f32 -1.442695, %v255_v28 }
 0x132   :  { %v602_v31 = vmul.f32 -1.442695, %v326_v29  ;;  %751 = vpow2.f32 %v601_v27 }
 0x133   :  { %753 = vpow2.f32 %v600_v30 }
 0x134   :  { %755 = vpow2.f32 %v602_v31 }
 0x13e   :  { %v750_v32 = vpop.eup %749 }
 0x13f   :  { %v752_v33 = vpop.eup %751  ;;  %v340_v34 = vadd.f32 1.0, %v750_v32 }
 0x140   :  { %v754_v35 = vpop.eup %753  ;;  %v342_v36 = vadd.f32 1.0, %v752_v33 }
 0x141   :  { %v756_v37 = vpop.eup %755  ;;  %757 = vrcp.f32 %v340_v34  ;;  %v341_v38 = vadd.f32 1.0, %v754_v35 }
 0x142   :  { %759 = vrcp.f32 %v342_v36  ;;  %v343_v39 = vadd.f32 1.0, %v756_v37 }
 0x143   :  { %761 = vrcp.f32 %v341_v38 }
 0x144   :  { %763 = vrcp.f32 %v343_v39 }
 0x14e   :  { %v758_v40 = vpop.eup %757 }
 0x14f   :  { %v760_v41 = vpop.eup %759  ;;  %v352_v45 = vmul.f32 %v758_v40, %v253_v22 }
 0x150   :  { %v762_v42 = vpop.eup %761  ;;  %v354_v47 = vmul.f32 %v760_v41, %v324_v23 }
 0x151   :  { %v764_v43 = vpop.eup %763  ;;  %v353_v44 = vmul.f32 %v762_v42, %v255_v28 }
 0x152   :  { %v355_v46 = vmul.f32 %v764_v43, %v326_v29 }
 0x153   :  { %491 = vmatprep.mubr.f32.mxu0 %v353_v44 }
 0x154   :  { %561 = vmatprep.mubr.f32.mxu1 %v355_v46  ;;  %492 = vmatmul.mubr.f32.vlgmr.msra.gmra.mxu0 %v352_v45 }
 0x155   :  { %562 = vmatmul.mubr.f32.vlgmr.msra.gmra.mxu1 %v354_v47 }
 0x214   :  { %v704_v48 = vpop.f32.mrf.mxu0 }
 0x215   :  { %v739_v49 = vpop.f32.mrf.mxu1 }
 0x216   :  { %v705_v51 = vpop.f32.mrf.mxu0 }
 0x217   :  { %v706_v52 = vadd.f32 %v705_v51, %v704_v48  ;;  %v740_v53 = vpop.f32.mrf.mxu1 }
 0x218   :  { %v741_v55 = vadd.f32 %v740_v53, %v739_v49 }
 0x219   :  { %v494_v54 = vadd.f32 %v706_v52, %v603_v50 }
 0x21b   :  { %v564_v56 = vadd.f32 %v741_v55, %v494_v54 }
 0x21d   :  { %567 = vst [vmem:[#allocation11] sm:$0xff] %v564_v56 }
 0x21e   :  { %844 = shalt.err (!%p841_p5)
}
 0x21f   :  { %577 = dma.vmem_to_hbm [thread:$0]  %s575_s8, 128, %s954_s6, [#allocation7]  }
 0x220   :  { %859 = dma.done.wait [#allocation7], 128  }
 0x221   :  { %860 = vsyncadd [#allocation7], 4294967168 }
 0x222   :  { %581 = vsyncpa [#allocation6], 1 }
 0x223   :  { %582 = vsyncpa [#allocation9], 1 }
 0x224   :  { %583 = vsyncpa [#allocation7], 1 }

</bundles_post_ra>
